<compile_context>
chip_gen: v6e
topology: v6e:2x2x1
jax: 0.10.0
libtpu: 0.0.40
codegen_flags: <defaults>
</compile_context>

<pallas_src>
import functools

import jax
import jax.numpy as jnp
from jax.experimental import pallas as pl
from jax.experimental.pallas import tpu as pltpu  # noqa: F401  (TPU backend)


def _attn_dropout_kernel(q_ref, k_ref, v_ref, u_ref, o_ref, *, p):
    # q_ref: (B, Sq, D), k_ref/v_ref: (B, Sk, D), u_ref: (B, Sq, Sk) uniforms.
    q = q_ref[...]
    k = k_ref[...]
    v = v_ref[...]

    # qk = q @ k^T per batch, contracting last dims directly (no k transpose).
    qk = jnp.einsum("bqd,bkd->bqk", q, k, preferred_element_type=jnp.float32)

    # torch.nn.Softmax(dim=1) on (B, Sq, Sk): normalize over the QUERY axis.
    m = jnp.max(qk, axis=1, keepdims=True)
    e = jnp.exp(qk - m)
    denom = jnp.sum(e, axis=1, keepdims=True)
    # Fold the dropout 1/(1-p) scale into the per-column reciprocal so the
    # scaling costs nothing extra per element.
    inv = jnp.float32(1.0 / (1.0 - p)) / denom

    # Dropout: keep each element with probability (1 - p).
    keep = u_ref[...] >= jnp.float32(p)
    dropped = jnp.where(keep, e * inv, jnp.float32(0.0))

    # out = dropped @ v  -> (B, Sq, D); f32 accumulation on the MXU.
    out = jnp.einsum("bqk,bkd->bqd", dropped.astype(v.dtype), v,
                     preferred_element_type=jnp.float32)
    o_ref[...] = out.astype(o_ref.dtype)


def attention_dropout(q, k, v, *, p=0.1, key=None):
    B, Sq, D = q.shape
    Sk = k.shape[1]
    if key is None:
        key = jax.random.PRNGKey(0)
    # One draw for the whole dropout mask; passed into the kernel so the
    # kernel itself only does a single compare per logit.
    u = jax.random.uniform(key, (B, Sq, Sk), dtype=jnp.float32)

    kernel = functools.partial(_attn_dropout_kernel, p=float(p))
    # Single invocation, whole-array blocks (block_shape == full array dims,
    # so no (8,128) divisibility constraint applies).
    return pl.pallas_call(
        kernel,
        grid=(),
        in_specs=[
            pl.BlockSpec((B, Sq, D), lambda: (0, 0, 0)),
            pl.BlockSpec((B, Sk, D), lambda: (0, 0, 0)),
            pl.BlockSpec((B, Sk, D), lambda: (0, 0, 0)),
            pl.BlockSpec((B, Sq, Sk), lambda: (0, 0, 0)),
        ],
        out_specs=pl.BlockSpec((B, Sq, D), lambda: (0, 0, 0)),
        out_shape=jax.ShapeDtypeStruct((B, Sq, D), q.dtype),
    )(q, k, v, u)


if __name__ == "__main__":
    key = jax.random.PRNGKey(0)
    kq, kk, kv, kd = jax.random.split(key, 4)
    # Shapes implied by the module: q, k, v each (1, 6, 8).
    q = jax.random.normal(kq, (1, 6, 8), dtype=jnp.float32)
    k = jax.random.normal(kk, (1, 6, 8), dtype=jnp.float32)
    v = jax.random.normal(kv, (1, 6, 8), dtype=jnp.float32)

    out = attention_dropout(q, k, v, p=0.1, key=kd)
    jax.block_until_ready(out)
    assert out.shape == (1, 6, 8)
    assert out.dtype == q.dtype
    assert bool(jnp.all(jnp.isfinite(out)))
    print("KERNEL_OK")
</pallas_src>

<mosaic_0001>
module attributes {stable_mosaic.version = 11 : i64} {
  func.func @_attn_dropout_kernel(%arg0: memref<1x6x8xf32, #tpu.memory_space<vmem>>, %arg1: memref<1x6x8xf32, #tpu.memory_space<vmem>>, %arg2: memref<1x6x8xf32, #tpu.memory_space<vmem>>, %arg3: memref<1x6x6xf32, #tpu.memory_space<vmem>>, %arg4: memref<1x6x8xf32, #tpu.memory_space<vmem>>) attributes {dimension_semantics = [], scalar_prefetch = 0 : i64, scratch_operands = 0 : i64, tpu.core_type = #tpu.core_type<tc>} {
    %c0 = arith.constant 0 : index
    %c0_0 = arith.constant 0 : index
    %c0_1 = arith.constant 0 : index
    %0 = vector.load %arg0[%c0, %c0_0, %c0_1] : memref<1x6x8xf32, #tpu.memory_space<vmem>>, vector<1x6x8xf32>
    %c0_2 = arith.constant 0 : index
    %c0_3 = arith.constant 0 : index
    %c0_4 = arith.constant 0 : index
    %1 = vector.load %arg1[%c0_2, %c0_3, %c0_4] : memref<1x6x8xf32, #tpu.memory_space<vmem>>, vector<1x6x8xf32>
    %c0_5 = arith.constant 0 : index
    %c0_6 = arith.constant 0 : index
    %c0_7 = arith.constant 0 : index
    %2 = vector.load %arg2[%c0_5, %c0_6, %c0_7] : memref<1x6x8xf32, #tpu.memory_space<vmem>>, vector<1x6x8xf32>
    "tpu.trace_start"() <{level = 10 : i32, message = "bqd,bkd->bqk"}> : () -> ()
    %cst = arith.constant dense<0.000000e+00> : vector<1x6x6xf32>
    %3 = tpu.matmul %0, %1, %cst {dimension_numbers = #tpu.dot_dimension_numbers<[2], [2], [1], [1], [0, 0, 0, 1, 1, 1], [0], [0]>} : vector<1x6x8xf32>, vector<1x6x8xf32>, vector<1x6x6xf32> -> vector<1x6x6xf32>
    "tpu.trace_stop"() : () -> ()
    %cst_8 = arith.constant dense<0xFF800000> : vector<1x6xf32>
    %4 = vector.multi_reduction <maximumf>, %3, %cst_8 [1] : vector<1x6x6xf32> to vector<1x6xf32>
    %5 = vector.shape_cast %4 : vector<1x6xf32> to vector<1x1x6xf32>
    %6 = vector.broadcast %5 : vector<1x1x6xf32> to vector<1x6x6xf32>
    %7 = arith.subf %3, %6 : vector<1x6x6xf32>
    %8 = math.exp %7 : vector<1x6x6xf32>
    %cst_9 = arith.constant dense<0.000000e+00> : vector<1x6xf32>
    %9 = vector.multi_reduction <add>, %8, %cst_9 [1] : vector<1x6x6xf32> to vector<1x6xf32>
    %10 = vector.shape_cast %9 : vector<1x6xf32> to vector<1x1x6xf32>
    %cst_10 = arith.constant 1.11111116 : f32
    %11 = vector.broadcast %cst_10 : f32 to vector<1x1x6xf32>
    %12 = arith.divf %11, %10 : vector<1x1x6xf32>
    %c0_11 = arith.constant 0 : index
    %c0_12 = arith.constant 0 : index
    %c0_13 = arith.constant 0 : index
    %13 = vector.load %arg3[%c0_11, %c0_12, %c0_13] : memref<1x6x6xf32, #tpu.memory_space<vmem>>, vector<1x6x6xf32>
    %cst_14 = arith.constant 1.000000e-01 : f32
    %14 = vector.broadcast %cst_14 : f32 to vector<1x6x6xf32>
    %15 = arith.cmpf oge, %13, %14 : vector<1x6x6xf32>
    %16 = vector.broadcast %12 : vector<1x1x6xf32> to vector<1x6x6xf32>
    %17 = arith.mulf %8, %16 : vector<1x6x6xf32>
    %cst_15 = arith.constant 0.000000e+00 : f32
    %18 = vector.broadcast %cst_15 : f32 to vector<1x6x6xf32>
    %19 = arith.select %15, %17, %18 : vector<1x6x6xi1>, vector<1x6x6xf32>
    "tpu.trace_start"() <{level = 10 : i32, message = "bqk,bkd->bqd"}> : () -> ()
    %cst_16 = arith.constant dense<0.000000e+00> : vector<1x6x8xf32>
    %20 = tpu.matmul %19, %2, %cst_16 {dimension_numbers = #tpu.dot_dimension_numbers<[2], [1], [1], [2], [0, 0, 0, 1, 1, 2], [0], [0]>} : vector<1x6x6xf32>, vector<1x6x8xf32>, vector<1x6x8xf32> -> vector<1x6x8xf32>
    "tpu.trace_stop"() : () -> ()
    %c0_17 = arith.constant 0 : index
    %c0_18 = arith.constant 0 : index
    %c0_19 = arith.constant 0 : index
    %21 = vector.load %arg4[%c0_17, %c0_18, %c0_19] : memref<1x6x8xf32, #tpu.memory_space<vmem>>, vector<1x6x8xf32>
    tpu.vector_store %arg4[%c0_17, %c0_18, %c0_19], %20 {strides = array<i32>} : memref<1x6x8xf32, #tpu.memory_space<vmem>>, vector<1x6x8xf32>,
    return
  }
}

</mosaic_0001>

<bundles_post_ra>
// kernel: tpu_custom_call.1
= control target key start
LH: loop header
LB: loop body
LE: loop exit
PB: predicated region body
PF: predicated region fallthrough
CT: control target
= control target key end

     0   :  { %vm20_vm0 = vcmask 64512   ;;  %v229_v0 = vmov 0.0   ;;  %vm230_vm1 = vmmov 0   ;;  %vm125_vm2 = vcmask 1045504   ;;  %s271_s1 = inlined_call_operand.vmem [shape: f32[1,6,8], index: 1, kind: input, shape index: {}]   ;;  %s272_s0 = inlined_call_operand.vmem [shape: f32[1,6,8], index: 0, kind: input, shape index: {}]   ;;  %s273_s2 = inlined_call_operand.vmem [shape: f32[1,6,8], index: 2, kind: input, shape index: {}]   ;;  %s274_s3 = inlined_call_operand.vmem [shape: f32[1,6,6], index: 3, kind: input, shape index: {}]   ;;  %s275_s4 = inlined_call_operand.vmem [shape: f32[1,6,8], index: 4, kind: output, shape index: {}]  }
   0x1   :  { %213 = vmatprep.subr.mxu0 %v229_v0  ;;  %v18_v1 = vld [vmem:[%s271_s1] sm:$0x3f]  ;;  %215 = vmatprep.mubr.msk.f32.mxu0 %vm230_vm1, %v229_v0  ;;  %vm97_vm3 = vcmask 46080   ;;  %vm121_vm5 = vcmask 48128   ;;  %vm199_vm6 = vcmask 62464  }
   0x2   :  { %214 = vmatpush3.xpose.msk.msra.mxu0 %vm20_vm0, %v18_v1  ;;  %v17_v2 = vld [vmem:[%s272_s0] sm:$0x3f]  ;;  %218 = vmatprep.subr.mxu1 %v229_v0 }
   0x3   :  { %220 = vmatprep.mubr.msk.f32.mxu1 %vm230_vm1, %v229_v0  ;;  %v19_v3 = vld [vmem:[%s273_s2] sm:$0x3f] }
   0x4   :  { %219 = vmatpush3.msk.msra.mxu1 %vm125_vm2, %v19_v3  ;;  %v117_v23 = vld [vmem:[%s274_s3] sm:$0x3f] }
   0x5   :  { %216 = vmatmul.mubr.msk.f32.vlgmr.msra.gmra.mxu0 %vm20_vm0, %v17_v2  ;;  %vm118_vm4 = vcmp.ge.f32.partialorder %v117_v23, 0.1 }
  0xc5   :  { %v93_v4 = vpop.f32.mrf.mxu0 }
  0xc6   :  { %v98_v5 = vsel %vm97_vm3, %v93_v4, -inf }
  0xc7   :  { %v99_v6 = vrot.slane %v98_v5, 4  ;;  %v217_v7 = vpop.f32.mrf.mxu0 }
  0xc9   :  { %v100_v8 = vmax.f32 %v98_v5, %v99_v6 }
  0xcb   :  { %v101_v9 = vrot.slane %v100_v8, 2 }
  0xcd   :  { %v102_v10 = vmax.f32 %v100_v8, %v101_v9 }
  0xcf   :  { %v103_v11 = vrot.slane %v102_v10, 1 }
  0xd1   :  { %v104_v12 = vmax.f32 %v102_v10, %v103_v11 }
  0xd3   :  { %v105_v13 = vsub.f32 %v93_v4, %v104_v12 }
  0xd5   :  { %v106_v14 = vmul.f32 1.442695, %v105_v13 }
  0xd7   :  { %225 = vpow2.f32 %v106_v14 }
  0xe4   :  { %v226_v15 = vpop.eup %225 }
  0xe5   :  { %v108_v16 = vsel %vm97_vm3, %v226_v15, 0.0 }
  0xe6   :  { %v109_v17 = vrot.slane %v108_v16, 4 }
  0xe8   :  { %v110_v18 = vadd.f32 %v109_v17, %v108_v16 }
  0xea   :  { %v111_v19 = vrot.slane %v110_v18, 2 }
  0xec   :  { %v112_v20 = vadd.f32 %v111_v19, %v110_v18 }
  0xee   :  { %v113_v21 = vrot.slane %v112_v20, 1 }
  0xf0   :  { %v114_v22 = vadd.f32 %v113_v21, %v112_v20 }
  0xf2   :  { %227 = vrcp.f32 %v114_v22 }
  0xff   :  { %v228_v24 = vpop.eup %227 }
 0x100   :  { %v116_v25 = vmul.f32 1.1111112, %v228_v24 }
 0x102   :  { %v119_v26 = vmul.f32 %v226_v15, %v116_v25 }
 0x104   :  { %v120_v27 = vsel %vm118_vm4, %v119_v26, 0.0 }
 0x105   :  { %221 = vmatmul.mubr.msk.f32.vlgmr.msra.gmra.mxu1 %vm121_vm5, %v120_v27 }
 0x1c5   :  { %v195_v28 = vpop.f32.mrf.mxu1 }
 0x1c6   :  { %200 = vst.msk [vmem:[%s275_s4] sm:$0x3f] %vm199_vm6, %v195_v28 }
 0x1c7   :  { %v222_v29 = vpop.f32.mrf.mxu1 }

</bundles_post_ra>
